<compile_context>
chip_gen: v5e
topology: v5e:2x2
jax: 0.10.0
libtpu: 0.0.40
codegen_flags: <defaults>
</compile_context>

<pallas_src>
import functools

import jax
import jax.numpy as jnp
from jax.experimental import pallas as pl
from jax.experimental.pallas import tpu as pltpu


# ----------------------------------------------------------------------------
# Kernel
# ----------------------------------------------------------------------------
def _layernorm(y, gamma, beta, eps=1e-5):
    # y: (T, E); gamma/beta: (1, E).  PyTorch LayerNorm: biased variance, f32.
    mean = jnp.mean(y, axis=-1, keepdims=True)
    c = y - mean
    var = jnp.mean(c * c, axis=-1, keepdims=True)
    inv = jax.lax.rsqrt(var + eps)
    return c * inv * gamma + beta


def transformer_block_kernel(
    x_ref,        # (1, T, E)     f32   one batch row-block per grid step
    wqkv_ref,     # (3, H, E, E)  bf16  head-major fused [wq*scale, wk, wv]
    wu_ref,       # (H, E, E)     bf16  head-major unify weight
    bu_ref,       # (1, E)        f32
    ln1_g_ref,    # (1, E)        f32
    ln1_b_ref,    # (1, E)        f32
    w1_ref,       # (E, FF)       bf16
    b1_ref,       # (1, FF)       f32
    w2_ref,       # (FF, E)       bf16
    b2_ref,       # (1, E)        f32
    ln2_g_ref,    # (1, E)        f32
    ln2_b_ref,    # (1, E)        f32
    out_ref,      # (1, T, E)     f32
    *,
    mask: bool,
):
    _, T, E = x_ref.shape
    H = wu_ref.shape[0]
    mm = wqkv_ref.dtype                      # matmul-operand dtype (bf16)

    x = x_ref[0].astype(jnp.float32)         # (T, E)
    # Head-batched view of x: head index on the leading (untiled) dim, so no
    # lane-offset slicing is ever needed for per-head data below.
    x_mm = jnp.broadcast_to(x.astype(mm), (H, T, E))

    # ---- Q/K/V projections: head-batched MXU matmuls, f32 accumulation -----
    # 1/sqrt(E) is pre-folded into wq (prepare_params), so no in-kernel scale.
    q = jnp.einsum('htd,hde->hte', x_mm, wqkv_ref[0],
                   preferred_element_type=jnp.float32)        # (H, T, E)
    k = jnp.einsum('htd,hde->hte', x_mm, wqkv_ref[1],
                   preferred_element_type=jnp.float32)        # (H, T, E)
    v = jnp.einsum('htd,hde->hte', x_mm, wqkv_ref[2],
                   preferred_element_type=jnp.float32)        # (H, T, E)

    # ---- attention logits: contract last dims (no explicit transpose) ------
    logits = jnp.einsum('hqd,hkd->hqk', q.astype(mm), k.astype(mm),
                        preferred_element_type=jnp.float32)   # (H, T, T)
    if mask:
        row = jax.lax.broadcasted_iota(jnp.int32, (T, T), 0)
        col = jax.lax.broadcasted_iota(jnp.int32, (T, T), 1)
        # large finite negative (not -inf) so a fully-masked row cannot NaN
        bias = jnp.where(col <= row, 0.0, -1e30).astype(jnp.float32)
        logits = logits + bias[None, :, :]

    # ---- softmax over keys (f32; EUP approx reciprocal for the denom) ------
    m = jnp.max(logits, axis=-1, keepdims=True)
    e = jnp.exp(logits - m)
    inv = pl.reciprocal(jnp.sum(e, axis=-1, keepdims=True), approx=True)
    p = e * inv

    ctx = jnp.einsum('hqk,hkd->hqd', p.astype(mm), v.astype(mm),
                     preferred_element_type=jnp.float32)      # (H, T, E)

    # ---- unify: head-batched matmul + head reduction ------------------------
    # == concat_h(ctx_h) @ wu, without materializing a lane concat.
    att = jnp.einsum('htd,hde->hte', ctx.astype(mm), wu_ref[...],
                     preferred_element_type=jnp.float32)      # (H, T, E)
    attended = jnp.sum(att, axis=0) + bu_ref[...]             # (T, E)

    # ---- residual + norm1 (f32); dropout p=0.0 -> identity ------------------
    y = _layernorm(attended + x, ln1_g_ref[...], ln1_b_ref[...])

    # ---- feed-forward --------------------------------------------------------
    h1 = jnp.dot(y.astype(mm), w1_ref[...],
                 preferred_element_type=jnp.float32) + b1_ref[...]   # (T, FF)
    h1 = jnp.maximum(h1, 0.0)
    ff = jnp.dot(h1.astype(mm), w2_ref[...],
                 preferred_element_type=jnp.float32) + b2_ref[...]   # (T, E)

    # ---- residual + norm2 (f32); dropout p=0.0 -> identity ------------------
    z = _layernorm(ff + y, ln2_g_ref[...], ln2_b_ref[...])

    out_ref[...] = z[None, :, :].astype(out_ref.dtype)


# ----------------------------------------------------------------------------
# Parameter preparation (done ONCE, not per call)
# ----------------------------------------------------------------------------
def prepare_params(params, *, heads, matmul_dtype=jnp.bfloat16):
    """Pre-fuse / re-layout / pre-cast weights for the kernel."""
    E = params["wq"].shape[0]
    H = heads
    scale = float(E) ** -0.5

    def head_major(w):   # (E, H*E) -> (H, E, E)
        return jnp.transpose(w.reshape(E, H, E), (1, 0, 2))

    wqkv = jnp.stack(
        [head_major(params["wq"] * scale),      # fold 1/sqrt(E) into wq
         head_major(params["wk"]),
         head_major(params["wv"])], axis=0).astype(matmul_dtype)   # (3,H,E,E)
    wu = params["wu"].reshape(H, E, E).astype(matmul_dtype)        # (H,E,E)

    return {
        "wqkv": wqkv, "wu": wu, "bu": params["bu"],
        "ln1_g": params["ln1_g"], "ln1_b": params["ln1_b"],
        "w1": params["w1"].astype(matmul_dtype), "b1": params["b1"],
        "w2": params["w2"].astype(matmul_dtype), "b2": params["b2"],
        "ln2_g": params["ln2_g"], "ln2_b": params["ln2_b"],
    }


# ----------------------------------------------------------------------------
# Wrapper
# ----------------------------------------------------------------------------
def _vmem_limit_bytes():
    # Per-generation budget: ~75% of capacity (never the whole VMEM, which
    # would leave v7x's 64 MiB with zero headroom for compiler scratch).
    try:
        cap = pltpu.get_tpu_info().vmem_capacity_bytes
        return max(16 * 1024 * 1024, int(cap * 0.75))
    except Exception:
        return 48 * 1024 * 1024   # safe on v5e/v6e (128 MiB) and v7x (64 MiB)


def transformer_block(x, prepared, *, mask=False):
    """x: (B, T, E) float32.  prepared: output of prepare_params()."""
    B, T, E = x.shape

    order = ["wqkv", "wu", "bu", "ln1_g", "ln1_b",
             "w1", "b1", "w2", "b2", "ln2_g", "ln2_b"]
    plist = [prepared[k] for k in order]

    def resident(p):
        nd = p.ndim
        # Constant block index -> weight stays resident across the batch grid
        # (Pallas skips re-DMA when the block index does not change).
        # TODO(synk): mark these pipeline_mode=pl.Buffered(1) to drop the
        # second buffer once validated on the target jax version (matters on
        # v7x's 64 MiB VMEM at production weight sizes).
        return pl.BlockSpec(p.shape, lambda b, _nd=nd: (0,) * _nd)

    in_specs = [pl.BlockSpec((1, T, E), lambda b: (b, 0, 0))]
    in_specs += [resident(p) for p in plist]

    kernel = functools.partial(transformer_block_kernel, mask=mask)

    return pl.pallas_call(
        kernel,
        out_shape=jax.ShapeDtypeStruct((B, T, E), x.dtype),
        grid=(B,),
        in_specs=in_specs,
        out_specs=pl.BlockSpec((1, T, E), lambda b: (b, 0, 0)),
        compiler_params=pltpu.CompilerParams(
            dimension_semantics=("parallel",),     # shard batches across TCs
            vmem_limit_bytes=_vmem_limit_bytes()),
    )(x, *plist)


# ----------------------------------------------------------------------------
# Pure-JAX reference (f32, for correctness check)
# ----------------------------------------------------------------------------
def transformer_block_ref(x, p, *, heads, mask=False):
    B, T, E = x.shape

    def ln(y, g, b, eps=1e-5):
        m = jnp.mean(y, -1, keepdims=True)
        v = jnp.mean((y - m) ** 2, -1, keepdims=True)
        return (y - m) / jnp.sqrt(v + eps) * g + b

    q = (x @ p["wq"]).reshape(B, T, heads, E).transpose(0, 2, 1, 3) * E ** -0.25
    k = (x @ p["wk"]).reshape(B, T, heads, E).transpose(0, 2, 1, 3) * E ** -0.25
    v = (x @ p["wv"]).reshape(B, T, heads, E).transpose(0, 2, 1, 3)
    logits = jnp.einsum("bhqe,bhke->bhqk", q, k)
    if mask:
        tri = jnp.tril(jnp.ones((T, T), bool))
        logits = jnp.where(tri, logits, -jnp.inf)
    att = jax.nn.softmax(logits, axis=-1)
    out = jnp.einsum("bhqk,bhke->bhqe", att, v)
    out = out.transpose(0, 2, 1, 3).reshape(B, T, heads * E)
    attended = out @ p["wu"] + p["bu"]
    y = ln(attended + x, p["ln1_g"], p["ln1_b"])
    ff = jnp.maximum(y @ p["w1"] + p["b1"], 0.0) @ p["w2"] + p["b2"]
    return ln(ff + y, p["ln2_g"], p["ln2_b"])


# ----------------------------------------------------------------------------
# Main
# ----------------------------------------------------------------------------
if __name__ == "__main__":
    B, T, E = 2, 8, 32
    HEADS = 4
    FF = 4 * E

    key = jax.random.PRNGKey(0)
    ks = jax.random.split(key, 8)

    def init(k, shape, scale=0.05):
        return jax.random.normal(k, shape, jnp.float32) * scale

    params = {
        "wq": init(ks[0], (E, HEADS * E)),
        "wk": init(ks[1], (E, HEADS * E)),
        "wv": init(ks[2], (E, HEADS * E)),
        "wu": init(ks[3], (HEADS * E, E)),
        "bu": jnp.zeros((1, E), jnp.float32),
        "ln1_g": jnp.ones((1, E), jnp.float32),
        "ln1_b": jnp.zeros((1, E), jnp.float32),
        "w1": init(ks[4], (E, FF)),
        "b1": jnp.zeros((1, FF), jnp.float32),
        "w2": init(ks[5], (FF, E)),
        "b2": jnp.zeros((1, E), jnp.float32),
        "ln2_g": jnp.ones((1, E), jnp.float32),
        "ln2_b": jnp.zeros((1, E), jnp.float32),
    }

    x = jax.random.normal(ks[6], (B, T, E), jnp.float32)

    # Weights fused / re-laid-out / cast ONCE (not inside the per-call path).
    prepared = prepare_params(params, heads=HEADS)

    # Exercise both the unmasked and causal paths.
    for mask in (False, True):
        out = transformer_block(x, prepared, mask=mask)
        out = jax.block_until_ready(out)
        ref = transformer_block_ref(x, params, heads=HEADS, mask=mask)
        assert out.shape == (B, T, E)
        # bf16 matmul operands (f32 accumulation) + approx reciprocal
        # => compare against the pure-f32 reference at a looser tolerance.
        assert jnp.allclose(out, ref, atol=2e-2, rtol=2e-2), \
            f"mismatch vs reference (mask={mask})"

    print("KERNEL_OK")
</pallas_src>

<mosaic_0001>
module attributes {stable_mosaic.version = 11 : i64} {
  func.func @transformer_block_kernel(%arg0: i32, %arg1: memref<1x8x32xf32, #tpu.memory_space<vmem>>, %arg2: memref<3x4x32x32xbf16, #tpu.memory_space<vmem>>, %arg3: memref<4x32x32xbf16, #tpu.memory_space<vmem>>, %arg4: memref<1x32xf32, #tpu.memory_space<vmem>>, %arg5: memref<1x32xf32, #tpu.memory_space<vmem>>, %arg6: memref<1x32xf32, #tpu.memory_space<vmem>>, %arg7: memref<32x128xbf16, #tpu.memory_space<vmem>>, %arg8: memref<1x128xf32, #tpu.memory_space<vmem>>, %arg9: memref<128x32xbf16, #tpu.memory_space<vmem>>, %arg10: memref<1x32xf32, #tpu.memory_space<vmem>>, %arg11: memref<1x32xf32, #tpu.memory_space<vmem>>, %arg12: memref<1x32xf32, #tpu.memory_space<vmem>>, %arg13: memref<1x8x32xf32, #tpu.memory_space<vmem>>) attributes {dimension_semantics = [#tpu.dimension_semantics<parallel>], iteration_bounds = array<i64: 2>, scalar_prefetch = 0 : i64, scratch_operands = 0 : i64, tpu.core_type = #tpu.core_type<tc>, window_params = [{transform_indices = @transform_0, window_bounds = array<i64: 1, 8, 32>}, {pipeline_mode = #tpu.pipeline_mode<synchronous>, transform_indices = @transform_1, window_bounds = array<i64: 3, 4, 32, 32>}, {pipeline_mode = #tpu.pipeline_mode<synchronous>, transform_indices = @transform_2, window_bounds = array<i64: 4, 32, 32>}, {pipeline_mode = #tpu.pipeline_mode<synchronous>, transform_indices = @transform_3, window_bounds = array<i64: 1, 32>}, {pipeline_mode = #tpu.pipeline_mode<synchronous>, transform_indices = @transform_4, window_bounds = array<i64: 1, 32>}, {pipeline_mode = #tpu.pipeline_mode<synchronous>, transform_indices = @transform_5, window_bounds = array<i64: 1, 32>}, {pipeline_mode = #tpu.pipeline_mode<synchronous>, transform_indices = @transform_6, window_bounds = array<i64: 32, 128>}, {pipeline_mode = #tpu.pipeline_mode<synchronous>, transform_indices = @transform_7, window_bounds = array<i64: 1, 128>}, {pipeline_mode = #tpu.pipeline_mode<synchronous>, transform_indices = @transform_8, window_bounds = array<i64: 128, 32>}, {pipeline_mode = #tpu.pipeline_mode<synchronous>, transform_indices = @transform_9, window_bounds = array<i64: 1, 32>}, {pipeline_mode = #tpu.pipeline_mode<synchronous>, transform_indices = @transform_10, window_bounds = array<i64: 1, 32>}, {pipeline_mode = #tpu.pipeline_mode<synchronous>, transform_indices = @transform_11, window_bounds = array<i64: 1, 32>}, {transform_indices = @transform_12, window_bounds = array<i64: 1, 8, 32>}]} {
    %c0 = arith.constant 0 : index
    %c0_0 = arith.constant 0 : index
    %c0_1 = arith.constant 0 : index
    %0 = vector.load %arg1[%c0, %c0_0, %c0_1] : memref<1x8x32xf32, #tpu.memory_space<vmem>>, vector<1x8x32xf32>
    %1 = vector.shape_cast %0 : vector<1x8x32xf32> to vector<8x32xf32>
    %2 = arith.truncf %1 : vector<8x32xf32> to vector<8x32xbf16>
    %3 = vector.shape_cast %2 : vector<8x32xbf16> to vector<1x8x32xbf16>
    %4 = vector.broadcast %3 : vector<1x8x32xbf16> to vector<4x8x32xbf16>
    %c0_2 = arith.constant 0 : index
    %c0_3 = arith.constant 0 : index
    %c0_4 = arith.constant 0 : index
    %c0_5 = arith.constant 0 : index
    %5 = vector.load %arg2[%c0_2, %c0_3, %c0_4, %c0_5] : memref<3x4x32x32xbf16, #tpu.memory_space<vmem>>, vector<1x4x32x32xbf16>
    %6 = vector.shape_cast %5 : vector<1x4x32x32xbf16> to vector<4x32x32xbf16>
    "tpu.trace_start"() <{level = 10 : i32, message = "htd,hde->hte"}> : () -> ()
    %cst = arith.constant dense<0.000000e+00> : vector<4x8x32xf32>
    %7 = tpu.matmul %4, %6, %cst {dimension_numbers = #tpu.dot_dimension_numbers<[2], [1], [1], [2], [0, 0, 0, 1, 1, 2], [0], [0]>} : vector<4x8x32xbf16>, vector<4x32x32xbf16>, vector<4x8x32xf32> -> vector<4x8x32xf32>
    "tpu.trace_stop"() : () -> ()
    %c1 = arith.constant 1 : index
    %c0_6 = arith.constant 0 : index
    %c0_7 = arith.constant 0 : index
    %c0_8 = arith.constant 0 : index
    %8 = vector.load %arg2[%c1, %c0_6, %c0_7, %c0_8] : memref<3x4x32x32xbf16, #tpu.memory_space<vmem>>, vector<1x4x32x32xbf16>
    %9 = vector.shape_cast %8 : vector<1x4x32x32xbf16> to vector<4x32x32xbf16>
    "tpu.trace_start"() <{level = 10 : i32, message = "htd,hde->hte"}> : () -> ()
    %cst_9 = arith.constant dense<0.000000e+00> : vector<4x8x32xf32>
    %10 = tpu.matmul %4, %9, %cst_9 {dimension_numbers = #tpu.dot_dimension_numbers<[2], [1], [1], [2], [0, 0, 0, 1, 1, 2], [0], [0]>} : vector<4x8x32xbf16>, vector<4x32x32xbf16>, vector<4x8x32xf32> -> vector<4x8x32xf32>
    "tpu.trace_stop"() : () -> ()
    %c2 = arith.constant 2 : index
    %c0_10 = arith.constant 0 : index
    %c0_11 = arith.constant 0 : index
    %c0_12 = arith.constant 0 : index
    %11 = vector.load %arg2[%c2, %c0_10, %c0_11, %c0_12] : memref<3x4x32x32xbf16, #tpu.memory_space<vmem>>, vector<1x4x32x32xbf16>
    %12 = vector.shape_cast %11 : vector<1x4x32x32xbf16> to vector<4x32x32xbf16>
    "tpu.trace_start"() <{level = 10 : i32, message = "htd,hde->hte"}> : () -> ()
    %cst_13 = arith.constant dense<0.000000e+00> : vector<4x8x32xf32>
    %13 = tpu.matmul %4, %12, %cst_13 {dimension_numbers = #tpu.dot_dimension_numbers<[2], [1], [1], [2], [0, 0, 0, 1, 1, 2], [0], [0]>} : vector<4x8x32xbf16>, vector<4x32x32xbf16>, vector<4x8x32xf32> -> vector<4x8x32xf32>
    "tpu.trace_stop"() : () -> ()
    %14 = arith.truncf %7 : vector<4x8x32xf32> to vector<4x8x32xbf16>
    %15 = arith.truncf %10 : vector<4x8x32xf32> to vector<4x8x32xbf16>
    "tpu.trace_start"() <{level = 10 : i32, message = "hqd,hkd->hqk"}> : () -> ()
    %cst_14 = arith.constant dense<0.000000e+00> : vector<4x8x8xf32>
    %16 = tpu.matmul %14, %15, %cst_14 {dimension_numbers = #tpu.dot_dimension_numbers<[2], [2], [1], [1], [0, 0, 0, 1, 1, 1], [0], [0]>} : vector<4x8x32xbf16>, vector<4x8x32xbf16>, vector<4x8x8xf32> -> vector<4x8x8xf32>
    "tpu.trace_stop"() : () -> ()
    %cst_15 = arith.constant dense<0xFF800000> : vector<4x8xf32>
    %17 = vector.multi_reduction <maximumf>, %16, %cst_15 [2] : vector<4x8x8xf32> to vector<4x8xf32>
    %18 = vector.shape_cast %17 : vector<4x8xf32> to vector<4x8x1xf32>
    %19 = vector.broadcast %18 : vector<4x8x1xf32> to vector<4x8x8xf32>
    %20 = arith.subf %16, %19 : vector<4x8x8xf32>
    %21 = math.exp %20 : vector<4x8x8xf32>
    %cst_16 = arith.constant dense<0.000000e+00> : vector<4x8xf32>
    %22 = vector.multi_reduction <add>, %21, %cst_16 [2] : vector<4x8x8xf32> to vector<4x8xf32>
    %23 = vector.shape_cast %22 : vector<4x8xf32> to vector<4x8x1xf32>
    %24 = tpu.reciprocal %23 {approx = true} : vector<4x8x1xf32> -> vector<4x8x1xf32>
    %25 = vector.broadcast %24 : vector<4x8x1xf32> to vector<4x8x8xf32>
    %26 = arith.mulf %21, %25 : vector<4x8x8xf32>
    %27 = arith.truncf %26 : vector<4x8x8xf32> to vector<4x8x8xbf16>
    %28 = arith.truncf %13 : vector<4x8x32xf32> to vector<4x8x32xbf16>
    "tpu.trace_start"() <{level = 10 : i32, message = "hqk,hkd->hqd"}> : () -> ()
    %cst_17 = arith.constant dense<0.000000e+00> : vector<4x8x32xf32>
    %29 = tpu.matmul %27, %28, %cst_17 {dimension_numbers = #tpu.dot_dimension_numbers<[2], [1], [1], [2], [0, 0, 0, 1, 1, 2], [0], [0]>} : vector<4x8x8xbf16>, vector<4x8x32xbf16>, vector<4x8x32xf32> -> vector<4x8x32xf32>
    "tpu.trace_stop"() : () -> ()
    %30 = arith.truncf %29 : vector<4x8x32xf32> to vector<4x8x32xbf16>
    %c0_18 = arith.constant 0 : index
    %c0_19 = arith.constant 0 : index
    %c0_20 = arith.constant 0 : index
    %31 = vector.load %arg3[%c0_18, %c0_19, %c0_20] : memref<4x32x32xbf16, #tpu.memory_space<vmem>>, vector<4x32x32xbf16>
    "tpu.trace_start"() <{level = 10 : i32, message = "htd,hde->hte"}> : () -> ()
    %cst_21 = arith.constant dense<0.000000e+00> : vector<4x8x32xf32>
    %32 = tpu.matmul %30, %31, %cst_21 {dimension_numbers = #tpu.dot_dimension_numbers<[2], [1], [1], [2], [0, 0, 0, 1, 1, 2], [0], [0]>} : vector<4x8x32xbf16>, vector<4x32x32xbf16>, vector<4x8x32xf32> -> vector<4x8x32xf32>
    "tpu.trace_stop"() : () -> ()
    %cst_22 = arith.constant dense<0.000000e+00> : vector<8x32xf32>
    %33 = vector.multi_reduction <add>, %32, %cst_22 [0] : vector<4x8x32xf32> to vector<8x32xf32>
    %c0_23 = arith.constant 0 : index
    %c0_24 = arith.constant 0 : index
    %34 = vector.load %arg4[%c0_23, %c0_24] : memref<1x32xf32, #tpu.memory_space<vmem>>, vector<1x32xf32>
    %35 = vector.broadcast %34 : vector<1x32xf32> to vector<8x32xf32>
    %36 = arith.addf %33, %35 : vector<8x32xf32>
    %37 = arith.addf %36, %1 : vector<8x32xf32>
    %c0_25 = arith.constant 0 : index
    %c0_26 = arith.constant 0 : index
    %38 = vector.load %arg5[%c0_25, %c0_26] : memref<1x32xf32, #tpu.memory_space<vmem>>, vector<1x32xf32>
    %c0_27 = arith.constant 0 : index
    %c0_28 = arith.constant 0 : index
    %39 = vector.load %arg6[%c0_27, %c0_28] : memref<1x32xf32, #tpu.memory_space<vmem>>, vector<1x32xf32>
    %cst_29 = arith.constant dense<0.000000e+00> : vector<8xf32>
    %40 = vector.multi_reduction <add>, %37, %cst_29 [1] : vector<8x32xf32> to vector<8xf32>
    %41 = vector.shape_cast %40 : vector<8xf32> to vector<8x1xf32>
    %cst_30 = arith.constant 3.200000e+01 : f32
    %42 = vector.broadcast %cst_30 : f32 to vector<8x1xf32>
    %43 = arith.divf %41, %42 : vector<8x1xf32>
    %44 = vector.broadcast %43 : vector<8x1xf32> to vector<8x32xf32>
    %45 = arith.subf %37, %44 : vector<8x32xf32>
    %46 = arith.mulf %45, %45 : vector<8x32xf32>
    %cst_31 = arith.constant dense<0.000000e+00> : vector<8xf32>
    %47 = vector.multi_reduction <add>, %46, %cst_31 [1] : vector<8x32xf32> to vector<8xf32>
    %48 = vector.shape_cast %47 : vector<8xf32> to vector<8x1xf32>
    %cst_32 = arith.constant 3.200000e+01 : f32
    %49 = vector.broadcast %cst_32 : f32 to vector<8x1xf32>
    %50 = arith.divf %48, %49 : vector<8x1xf32>
    %cst_33 = arith.constant 9.99999974E-6 : f32
    %51 = vector.broadcast %cst_33 : f32 to vector<8x1xf32>
    %52 = arith.addf %50, %51 : vector<8x1xf32>
    %53 = math.rsqrt %52 : vector<8x1xf32>
    %54 = vector.broadcast %53 : vector<8x1xf32> to vector<8x32xf32>
    %55 = arith.mulf %45, %54 : vector<8x32xf32>
    %56 = vector.broadcast %38 : vector<1x32xf32> to vector<8x32xf32>
    %57 = arith.mulf %55, %56 : vector<8x32xf32>
    %58 = vector.broadcast %39 : vector<1x32xf32> to vector<8x32xf32>
    %59 = arith.addf %57, %58 : vector<8x32xf32>
    %60 = arith.truncf %59 : vector<8x32xf32> to vector<8x32xbf16>
    %c0_34 = arith.constant 0 : index
    %c0_35 = arith.constant 0 : index
    %61 = vector.load %arg7[%c0_34, %c0_35] : memref<32x128xbf16, #tpu.memory_space<vmem>>, vector<32x128xbf16>
    %cst_36 = arith.constant dense<0.000000e+00> : vector<8x128xf32>
    %62 = tpu.matmul %60, %61, %cst_36 {dimension_numbers = #tpu.dot_dimension_numbers<[1], [0], [0], [1], [0, 0, 1, 1], [], []>} : vector<8x32xbf16>, vector<32x128xbf16>, vector<8x128xf32> -> vector<8x128xf32>
    %c0_37 = arith.constant 0 : index
    %c0_38 = arith.constant 0 : index
    %63 = vector.load %arg8[%c0_37, %c0_38] : memref<1x128xf32, #tpu.memory_space<vmem>>, vector<1x128xf32>
    %64 = vector.broadcast %63 : vector<1x128xf32> to vector<8x128xf32>
    %65 = arith.addf %62, %64 : vector<8x128xf32>
    %cst_39 = arith.constant 0.000000e+00 : f32
    %66 = vector.broadcast %cst_39 : f32 to vector<8x128xf32>
    %67 = arith.maximumf %65, %66 : vector<8x128xf32>
    %68 = arith.truncf %67 : vector<8x128xf32> to vector<8x128xbf16>
    %c0_40 = arith.constant 0 : index
    %c0_41 = arith.constant 0 : index
    %69 = vector.load %arg9[%c0_40, %c0_41] : memref<128x32xbf16, #tpu.memory_space<vmem>>, vector<128x32xbf16>
    %cst_42 = arith.constant dense<0.000000e+00> : vector<8x32xf32>
    %70 = tpu.matmul %68, %69, %cst_42 {dimension_numbers = #tpu.dot_dimension_numbers<[1], [0], [0], [1], [0, 0, 1, 1], [], []>} : vector<8x128xbf16>, vector<128x32xbf16>, vector<8x32xf32> -> vector<8x32xf32>
    %c0_43 = arith.constant 0 : index
    %c0_44 = arith.constant 0 : index
    %71 = vector.load %arg10[%c0_43, %c0_44] : memref<1x32xf32, #tpu.memory_space<vmem>>, vector<1x32xf32>
    %72 = vector.broadcast %71 : vector<1x32xf32> to vector<8x32xf32>
    %73 = arith.addf %70, %72 : vector<8x32xf32>
    %74 = arith.addf %73, %59 : vector<8x32xf32>
    %c0_45 = arith.constant 0 : index
    %c0_46 = arith.constant 0 : index
    %75 = vector.load %arg11[%c0_45, %c0_46] : memref<1x32xf32, #tpu.memory_space<vmem>>, vector<1x32xf32>
    %c0_47 = arith.constant 0 : index
    %c0_48 = arith.constant 0 : index
    %76 = vector.load %arg12[%c0_47, %c0_48] : memref<1x32xf32, #tpu.memory_space<vmem>>, vector<1x32xf32>
    %cst_49 = arith.constant dense<0.000000e+00> : vector<8xf32>
    %77 = vector.multi_reduction <add>, %74, %cst_49 [1] : vector<8x32xf32> to vector<8xf32>
    %78 = vector.shape_cast %77 : vector<8xf32> to vector<8x1xf32>
    %cst_50 = arith.constant 3.200000e+01 : f32
    %79 = vector.broadcast %cst_50 : f32 to vector<8x1xf32>
    %80 = arith.divf %78, %79 : vector<8x1xf32>
    %81 = vector.broadcast %80 : vector<8x1xf32> to vector<8x32xf32>
    %82 = arith.subf %74, %81 : vector<8x32xf32>
    %83 = arith.mulf %82, %82 : vector<8x32xf32>
    %cst_51 = arith.constant dense<0.000000e+00> : vector<8xf32>
    %84 = vector.multi_reduction <add>, %83, %cst_51 [1] : vector<8x32xf32> to vector<8xf32>
    %85 = vector.shape_cast %84 : vector<8xf32> to vector<8x1xf32>
    %cst_52 = arith.constant 3.200000e+01 : f32
    %86 = vector.broadcast %cst_52 : f32 to vector<8x1xf32>
    %87 = arith.divf %85, %86 : vector<8x1xf32>
    %cst_53 = arith.constant 9.99999974E-6 : f32
    %88 = vector.broadcast %cst_53 : f32 to vector<8x1xf32>
    %89 = arith.addf %87, %88 : vector<8x1xf32>
    %90 = math.rsqrt %89 : vector<8x1xf32>
    %91 = vector.broadcast %90 : vector<8x1xf32> to vector<8x32xf32>
    %92 = arith.mulf %82, %91 : vector<8x32xf32>
    %93 = vector.broadcast %75 : vector<1x32xf32> to vector<8x32xf32>
    %94 = arith.mulf %92, %93 : vector<8x32xf32>
    %95 = vector.broadcast %76 : vector<1x32xf32> to vector<8x32xf32>
    %96 = arith.addf %94, %95 : vector<8x32xf32>
    %97 = vector.shape_cast %96 : vector<8x32xf32> to vector<1x8x32xf32>
    %c0_54 = arith.constant 0 : index
    %c0_55 = arith.constant 0 : index
    %c0_56 = arith.constant 0 : index
    %98 = vector.load %arg13[%c0_54, %c0_55, %c0_56] : memref<1x8x32xf32, #tpu.memory_space<vmem>>, vector<1x8x32xf32>
    tpu.vector_store %arg13[%c0_54, %c0_55, %c0_56], %97 {strides = array<i32>} : memref<1x8x32xf32, #tpu.memory_space<vmem>>, vector<1x8x32xf32>,
    return
  }
  func.func @transform_0(%arg0: i32) -> (i32, i32, i32) {
    %c0_i32 = arith.constant 0 : i32
    %c0_i32_0 = arith.constant 0 : i32
    %c0_i32_1 = arith.constant 0 : i32
    return %arg0, %c0_i32, %c0_i32_0 : i32, i32, i32
  }
  func.func @transform_1(%arg0: i32) -> (i32, i32, i32, i32) {
    %c0_i32 = arith.constant 0 : i32
    %c0_i32_0 = arith.constant 0 : i32
    %c0_i32_1 = arith.constant 0 : i32
    %c0_i32_2 = arith.constant 0 : i32
    %c0_i32_3 = arith.constant 0 : i32
    return %c0_i32, %c0_i32_0, %c0_i32_1, %c0_i32_2 : i32, i32, i32, i32
  }
  func.func @transform_2(%arg0: i32) -> (i32, i32, i32) {
    %c0_i32 = arith.constant 0 : i32
    %c0_i32_0 = arith.constant 0 : i32
    %c0_i32_1 = arith.constant 0 : i32
    %c0_i32_2 = arith.constant 0 : i32
    return %c0_i32, %c0_i32_0, %c0_i32_1 : i32, i32, i32
  }
  func.func @transform_3(%arg0: i32) -> (i32, i32) {
    %c0_i32 = arith.constant 0 : i32
    %c0_i32_0 = arith.constant 0 : i32
    %c0_i32_1 = arith.constant 0 : i32
    return %c0_i32, %c0_i32_0 : i32, i32
  }
  func.func @transform_4(%arg0: i32) -> (i32, i32) {
    %c0_i32 = arith.constant 0 : i32
    %c0_i32_0 = arith.constant 0 : i32
    %c0_i32_1 = arith.constant 0 : i32
    return %c0_i32, %c0_i32_0 : i32, i32
  }
  func.func @transform_5(%arg0: i32) -> (i32, i32) {
    %c0_i32 = arith.constant 0 : i32
    %c0_i32_0 = arith.constant 0 : i32
    %c0_i32_1 = arith.constant 0 : i32
    return %c0_i32, %c0_i32_0 : i32, i32
  }
  func.func @transform_6(%arg0: i32) -> (i32, i32) {
    %c0_i32 = arith.constant 0 : i32
    %c0_i32_0 = arith.constant 0 : i32
    %c0_i32_1 = arith.constant 0 : i32
    return %c0_i32, %c0_i32_0 : i32, i32
  }
  func.func @transform_7(%arg0: i32) -> (i32, i32) {
    %c0_i32 = arith.constant 0 : i32
    %c0_i32_0 = arith.constant 0 : i32
    %c0_i32_1 = arith.constant 0 : i32
    return %c0_i32, %c0_i32_0 : i32, i32
  }
  func.func @transform_8(%arg0: i32) -> (i32, i32) {
    %c0_i32 = arith.constant 0 : i32
    %c0_i32_0 = arith.constant 0 : i32
    %c0_i32_1 = arith.constant 0 : i32
    return %c0_i32, %c0_i32_0 : i32, i32
  }
  func.func @transform_9(%arg0: i32) -> (i32, i32) {
    %c0_i32 = arith.constant 0 : i32
    %c0_i32_0 = arith.constant 0 : i32
    %c0_i32_1 = arith.constant 0 : i32
    return %c0_i32, %c0_i32_0 : i32, i32
  }
  func.func @transform_10(%arg0: i32) -> (i32, i32) {
    %c0_i32 = arith.constant 0 : i32
    %c0_i32_0 = arith.constant 0 : i32
    %c0_i32_1 = arith.constant 0 : i32
    return %c0_i32, %c0_i32_0 : i32, i32
  }
  func.func @transform_11(%arg0: i32) -> (i32, i32) {
    %c0_i32 = arith.constant 0 : i32
    %c0_i32_0 = arith.constant 0 : i32
    %c0_i32_1 = arith.constant 0 : i32
    return %c0_i32, %c0_i32_0 : i32, i32
  }
  func.func @transform_12(%arg0: i32) -> (i32, i32, i32) {
    %c0_i32 = arith.constant 0 : i32
    %c0_i32_0 = arith.constant 0 : i32
    %c0_i32_1 = arith.constant 0 : i32
    return %arg0, %c0_i32, %c0_i32_0 : i32, i32, i32
  }
}

</mosaic_0001>

<bundles_post_ra>
// kernel: tpu_custom_call.1
= control target key start
LH: loop header
LB: loop body
LE: loop exit
PB: predicated region body
PF: predicated region fallthrough
CT: control target
= control target key end

     0   :  { %17 = vsyncpa [#allocation3], 0  ;;  %s2232_s0 = inlined_call_operand.vmem [shape: f32[2,8,32], index: 0, kind: input, shape index: {}]   ;;  %s2233_s1 = inlined_call_operand.hbm [shape: bf16[3,4,32,32], index: 1, kind: input, shape index: {}]   ;;  %s2234_s2 = inlined_call_operand.vmem [shape: bf16[4,32,32], index: 2, kind: input, shape index: {}]   ;;  %s2235_s3 = inlined_call_operand.vmem [shape: f32[1,32], index: 3, kind: input, shape index: {}]   ;;  %s2236_s4 = inlined_call_operand.vmem [shape: f32[1,32], index: 4, kind: input, shape index: {}]   ;;  %s2237_s5 = inlined_call_operand.vmem [shape: f32[1,32], index: 5, kind: input, shape index: {}]   ;;  %s2238_s6 = inlined_call_operand.hbm [shape: bf16[32,128], index: 6, kind: input, shape index: {}]   ;;  %s2239_s7 = inlined_call_operand.vmem [shape: f32[1,128], index: 7, kind: input, shape index: {}]   ;;  %s2240_s8 = inlined_call_operand.vmem [shape: bf16[128,32], index: 8, kind: input, shape index: {}]   ;;  %s2241_s9 = inlined_call_operand.vmem [shape: f32[1,32], index: 9, kind: input, shape index: {}]   ;;  %s2242_s10 = inlined_call_operand.vmem [shape: f32[1,32], index: 10, kind: input, shape index: {}]   ;;  %s2243_s11 = inlined_call_operand.vmem [shape: f32[1,32], index: 11, kind: input, shape index: {}]   ;;  %s2244_s12 = inlined_call_operand.hbm [shape: f32[2,8,32], index: 12, kind: output, shape index: {}]  }
   0x1   :  { %18 = vsyncpa [#allocation6], 0 }
   0x2   :  { %19 = vsyncpa [#allocation4], 0 }
   0x3   :  { %21 = vsyncpa [#allocation4 + $0x1], 0  ;;  %s1992_s21 = smov 0   ;;  %s1994_s22 = smov 0  }
   0x4   :  { %s1996_s23 = smov 0   ;;  %s1998_s24 = smov 0  }
   0x5 LB: > { %2248 = sst [smem:[#allocation11_spill]] %s1916_s23  ;;  %s2013_s25 = sadd.s32 4294967295, %s1920_s24   ;;  %s1920_s24 = sphi %s1998_s24, %s2254_s24   ;;  %s1916_s23 = sphi %s1996_s23, %s2256_s23   ;;  %s1912_s22 = sphi %s1994_s22, %s2258_s22   ;;  %s1908_s21 = sphi %s1992_s21, %s2257_s21  }
   0x6   : > { %s1449_s26 = sadd.s32 4294967294, %s1920_s24   ;;  %s2017_s27 = sadd.s32 1, %s1920_s24  }
   0x7   : > { %2249 = sst [smem:[#allocation12_spill]] %s2017_s27  ;;  %s291_s28 = sadd.s32 1, %s1916_s23 }
   0x8   : > { %s288_s29 = ssub.s32 %s1920_s24, %s2017_s27  ;;  %p301_p0 = scmp.ne.s32.totalorder %s1916_s23, %s1912_s22 }
   0x9   : > { %p289_p1 = scmp.eq.s32.totalorder %s288_s29, 0  ;;  %p302_p2 = scmp.eq.s32.totalorder %s2013_s25, 1 }
   0xa   : > { %p307_p3 = scmp.ne.s32.totalorder %s1912_s22, %s1908_s21  ;;  %p308_p4 = scmp.eq.s32.totalorder %s1449_s26, 1 }
   0xb   : > { %s2028_s30 = scalar_select %p289_p1, %s1916_s23, %s291_s28  }
   0xc   : > { %p2030_p5 = por %p302_p2, %p301_p0  ;;  %p2034_p6 = por %p308_p4, %p307_p3 }
   0xd   : > { %2250 = sst [smem:[#allocation13_spill]] %s2028_s30  ;;  %p1450_p7 = scmp.ge.s32.totalorder %s1920_s24, 1 }
   0xe   : > { %p315_p8 = scmp.lt.s32.totalorder %s1920_s24, 3  ;;  %p1719_p9 = scmp.eq.s32.totalorder %s2013_s25, 0 }
   0xf   : > { %s326_s18 = sshll.u32 %s2233_s1, 4  ;;  %s1922_s19 = smov [#allocation2]   ;;  %s327_s18 = int_to_ptr.hbm [resolvable:$true] %s326_s18 }
  0x10   : > { %p2041_p10 = pnand %p1450_p7, %p315_p8  ;;  %s328_s20 = sshll.u32 %s1922_s19, 4  ;;  %s329_s20 = int_to_ptr.vmem [resolvable:$true] %s328_s20 }
  0x11   : > { %s352_s29 = sshll.u32 %s2238_s6, 4  ;;  %s1923_s30 = smov 64   ;;  %s353_s29 = int_to_ptr.hbm [resolvable:$true] %s352_s29 }
  0x12   : > { %p1708_p11 = pneg %p2041_p10  ;;  %s1924_s23 = smov 4  }
  0x13   : > { %s1925_s27 = smov [#allocation5]   ;;  %392 = sbr.rel (%p2041_p10) target bundleno = 1683 (0x693), region = 68 }
  0x14   : > { %p1709_p12 = pnand %p1719_p9, %p1708_p11  ;;  %s354_s16 = sshll.u32 %s1925_s27, 4  ;;  %s355_s16 = int_to_ptr.vmem [resolvable:$true] %s354_s16 }
  0x16   : > { %1711 = dma.hbm_to_vmem [thread:$0]  (!%p1709_p12), %s327_s18, 3072, %s329_s20, [#allocation3], %s1923_s30, %s1923_s30, %s1924_s23  }
  0x17   : > { %1714 = dma.hbm_to_vmem [thread:$0]  (!%p1709_p12), %s353_s29, 256, %s355_s16, [#allocation6], %s1923_s30, %s1923_s30, %s1924_s23  }
  0x18   : > { %1895 = dma.done.wait (%p1719_p9), [#allocation3], 3072  }
  0x19   : > { %1897 = vsyncadd (%p1719_p9), [#allocation3], 4294964224 }
  0x1a   : > { %1899 = dma.done.wait (%p1719_p9), [#allocation6], 256  }
  0x1b   : > { %1901 = vsyncadd (%p1719_p9), [#allocation6], 4294967040  ;;  %p439_p13 = scmp.lt.s32.totalorder %s2013_s25, 1  ;;  %v1657_v0 = vld [vmem:[#allocation2 + $0x8] sm:$0xff]  ;;  %v1659_v1 = vld [vmem:[#allocation2 + $0x18] sm:$0xff]  ;;  %vm474_vm0 = vcmask 261120  }
  0x1c   : > { %v1663_v2 = vld [vmem:[#allocation2 + $0x38] sm:$0xff]  ;;  %484 = vmatpush.bf16.msra.mxu0 %v1657_v0  ;;  %509 = vmatpush.bf16.msra.mxu2 %v1659_v1  ;;  %v1656_v4 = vld [vmem:[#allocation2] sm:$0xff]  ;;  %v1658_v5 = vld [vmem:[#allocation2 + $0x10] sm:$0xff]  ;;  %vm940_vm1 = vcmask 1043456   ;;  %vm884_vm2 = vcmask 64512   ;;  %s436_s16 = sand.u32 1, %s1912_s22  }
  0x1d   : > { %s440_s27 = scalar_select %p439_p13, %s2013_s25, 1  ;;  %v1667_v3 = vld [vmem:[#allocation2 + $0x58] sm:$0xff]  ;;  %559 = vmatpush.bf16.msra.mxu3 %v1663_v2  ;;  %v1662_v7 = vld [vmem:[#allocation2 + $0x30] sm:$0xff]  ;;  %v1661_v9 = vld [vmem:[#allocation2 + $0x28] sm:$0xff] }
  0x1e   : > { %626 = vmatpush.bf16.msra.mxu1 %v1667_v3  ;;  %v1666_v8 = vld [vmem:[#allocation2 + $0x50] sm:$0xff]  ;;  %v1665_v10 = vld [vmem:[#allocation2 + $0x48] sm:$0xff]  ;;  %v1671_v12 = vld [vmem:[#allocation2 + $0x78] sm:$0xff]  ;;  %s1353_s30 = scalar_lea.sflag [#allocation4], %s436_s16 }
  0x1f   : > { %s1458_s23 = sshll.u32 %s440_s27, 3  ;;  %v1660_v13 = vld [vmem:[#allocation2 + $0x20] sm:$0xff]  ;;  %v1669_v15 = vld [vmem:[#allocation2 + $0x68] sm:$0xff]  ;;  %v1675_v16 = vld [vmem:[#allocation2 + $0x98] sm:$0xff]  ;;  %s1457_s27 = sshll.u32 %s436_s16, 3 }
  0x20   : > { %s442_s17 = scalar_lea.vmem %s2232_s0, %s1458_s23  ;;  %485 = vmatpush.bf16.msra.mxu0 %v1656_v4  ;;  %510 = vmatpush.bf16.msra.mxu2 %v1658_v5  ;;  %v1664_v14 = vld [vmem:[#allocation2 + $0x40] sm:$0xff]  ;;  %v1670_v17 = vld [vmem:[#allocation2 + $0x70] sm:$0xff]  ;;  %v1673_v20 = vld [vmem:[#allocation2 + $0x88] sm:$0xff]  ;;  %s1653_s23 = sshll.u32 %s2013_s25, 3 }
  0x21   : > { %v2070_v6 = vld [vmem:[%s442_s17] sm:$0xff]  ;;  %560 = vmatpush.bf16.msra.mxu3 %v1662_v7  ;;  %v1674_v18 = vld [vmem:[#allocation2 + $0x90] sm:$0xff]  ;;  %v1679_v22 = vld [vmem:[#allocation2 + $0xb8] sm:$0xff]  ;;  %s1363_s19 = scalar_lea.hbm %s2244_s12, %s1653_s23  ;;  %s438_s28 = scalar_lea.vmem [#allocation7], %s1457_s27 }
  0x22   : > { %v445_v11 = vpack.c.bf16 %v2070_v6, %v2070_v6  ;;  %627 = vmatpush.bf16.msra.mxu1 %v1666_v8  ;;  %v1668_v19 = vld [vmem:[#allocation2 + $0x60] sm:$0xff]  ;;  %v1678_v23 = vld [vmem:[#allocation2 + $0xb0] sm:$0xff]  ;;  %v1677_v24 = vld [vmem:[#allocation2 + $0xa8] sm:$0xff]  ;;  %s1365_s25 = sshll.u32 %s438_s28, 4  ;;  %s1367_s29 = sshll.u32 %s1363_s19, 4  ;;  %s1366_s25 = int_to_ptr.vmem [resolvable:$true] %s1365_s25  ;;  %s1368_s29 = int_to_ptr.hbm [resolvable:$true] %s1367_s29 }
  0x23   : > { %v1672_v21 = vld [vmem:[#allocation2 + $0x80] sm:$0xff]  ;;  %s1864_s15 = sshra.s32 %s1368_s29, 4  ;;  %s1870_s27 = scalar_lea.hbm %s2244_s12, 16  ;;  %s1865_s15 = int_to_ptr.hbm [resolvable:$true] %s1864_s15 }
  0x24   : > { %534 = vmatpush.bf16.msrb.mxu2 %v1661_v9  ;;  %601 = vmatpush.bf16.msrb.mxu0 %v1665_v10  ;;  %v1676_v25 = vld [vmem:[#allocation2 + $0xa0] sm:$0xff]  ;;  %s1866_s23 = scalar_lea.hbm %s1865_s15, 8  ;;  %p1871_p3 = scmp.lt.s32.totalorder %s1865_s15, %s2244_s12 }
  0x25   : > { %1467 = vmatmul.msk.bf16.vlgmr.msra.gmra.mxu0 %vm474_vm0, %v445_v11  ;;  %1476 = vmatmul.msk.bf16.vlgmr.msra.gmra.mxu2 %vm474_vm0, %v445_v11  ;;  %p1867_p0 = scmp.ne.s32.totalorder %s1865_s15, %s1866_s23  ;;  %p1872_p4 = scmp.lt.s32.totalorder %s1870_s27, %s1866_s23 }
  0x26   : > { %1494 = vmatmul.msk.bf16.vlgmr.msra.gmra.mxu3 %vm474_vm0, %v445_v11  ;;  %1512 = vmatmul.msk.bf16.vlgmr.msra.gmra.mxu1 %vm474_vm0, %v445_v11 }
  0x27   : > { %676 = vmatpush.bf16.msrb.mxu3 %v1671_v12  ;;  %743 = vmatpush.bf16.msrb.mxu1 %v1675_v16  ;;  %p1868_p1 = pnand %p1867_p0, %p2030_p5  ;;  %p1873_p7 = por %p1872_p4, %p1871_p3 }
  0x28   : > { %535 = vmatpush.bf16.msrb.mxu2 %v1660_v13  ;;  %602 = vmatpush.bf16.msrb.mxu0 %v1664_v14 }
  0x29   : > { %p1869_p2 = pneg %p1868_p1 }
  0x2b   : > { %677 = vmatpush.bf16.msrb.mxu3 %v1670_v17  ;;  %744 = vmatpush.bf16.msrb.mxu1 %v1674_v18  ;;  %p1874_p8 = pnand %p1873_p7, %p1869_p2 }
  0x2c   : > { %651 = vmatpush.bf16.msra.mxu2 %v1669_v15  ;;  %718 = vmatpush.bf16.msra.mxu0 %v1673_v20 }
  0x2f   : > { %793 = vmatpush.bf16.msra.mxu3 %v1679_v22 }
  0x30   : > { %652 = vmatpush.bf16.msra.mxu2 %v1668_v19  ;;  %719 = vmatpush.bf16.msra.mxu0 %v1672_v21 }
  0x33   : > { %794 = vmatpush.bf16.msra.mxu3 %v1678_v23 }
  0x35   : > { %1485 = vmatmul.msk.bf16.vlgmr.msrb.gmra.mxu2 %vm474_vm0, %v445_v11  ;;  %1503 = vmatmul.msk.bf16.vlgmr.msrb.gmra.mxu0 %vm474_vm0, %v445_v11 }
  0x36   : > { %1530 = vmatmul.msk.bf16.vlgmr.msrb.gmra.mxu3 %vm474_vm0, %v445_v11  ;;  %1548 = vmatmul.msk.bf16.vlgmr.msrb.gmra.mxu1 %vm474_vm0, %v445_v11 }
  0x37   : > { %768 = vmatpush.bf16.msrb.mxu2 %v1677_v24 }
  0x3b   : > { %769 = vmatpush.bf16.msrb.mxu2 %v1676_v25 }
  0x45   : > { %1521 = vmatmul.msk.bf16.vlgmr.msra.gmra.mxu2 %vm474_vm0, %v445_v11  ;;  %1539 = vmatmul.msk.bf16.vlgmr.msra.gmra.mxu0 %vm474_vm0, %v445_v11 }
  0x46   : > { %1566 = vmatmul.msk.bf16.vlgmr.msra.gmra.mxu3 %vm474_vm0, %v445_v11 }
  0x55   : > { %1557 = vmatmul.msk.bf16.vlgmr.msrb.gmra.mxu2 %vm474_vm0, %v445_v11 }
  0xa2   : > { %v487_v26 = vpop.f32.mrf.mxu0 }
  0xa3   : > { %v629_v27 = vpop.f32.mrf.mxu1  ;;  %v800_v44 = vpack.c.bf16 %v487_v26, %v487_v26 }
  0xa4   : > { %v805_v28 = vpack.c.bf16 %v629_v27, %v629_v27 }
  0xa6   : > { %v831_v29 = vsel %vm474_vm0, %v805_v28, 0 }
  0xa7   : > { %840 = vmatpush.bf16.xpose.msra.mxu1 %v831_v29 }
  0xa8   : > { %v512_v30 = vpop.f32.mrf.mxu2 }
  0xa9   : > { %v562_v31 = vpop.f32.mrf.mxu3  ;;  %v801_v34 = vpack.c.bf16 %v512_v30, %v512_v30 }
  0xaa   : > { %v489_v32 = vpop.f32.mrf.mxu0  ;;  %v803_v50 = vpack.c.bf16 %v562_v31, %v562_v31 }
  0xab   : > { %v631_v33 = vpop.f32.mrf.mxu1 }
  0xae   : > { %1568 = vmatmul.msk.bf16.vlgmr.msra.gmra.mxu1 %vm474_vm0, %v801_v34 }
  0xb0   : > { %v514_v35 = vpop.f32.mrf.mxu2 }
  0xb1   : > { %v564_v36 = vpop.f32.mrf.mxu3 }
  0xb2   : > { %v604_v37 = vpop.f32.mrf.mxu0 }
  0xb3   : > { %v804_v38 = vpack.c.bf16 %v604_v37, %v604_v37  ;;  %v746_v39 = vpop.f32.mrf.mxu1 }
  0xb4   : > { %v934_v40 = vpack.c.bf16 %v746_v39, %v746_v39 }
  0xb5   : > { %v812_v41 = vsel %vm474_vm0, %v804_v38, 0 }
  0xb6   : > { %821 = vmatpush.bf16.xpose.msrb.mxu0 %v812_v41  ;;  %v961_v42 = vsel %vm940_vm1, %v934_v40, 0 }
  0xb7   : > { %970 = vmatpush.bf16.msrb.mxu1 %v961_v42 }
  0xb8   : > { %v537_v43 = vpop.f32.mrf.mxu2 }
  0xb9   : > { %v679_v45 = vpop.f32.mrf.mxu3  ;;  %v802_v57 = vpack.c.bf16 %v537_v43, %v537_v43 }
  0xba   : > { %v807_v46 = vpack.c.bf16 %v679_v45, %v679_v45  ;;  %v606_v47 = vpop.f32.mrf.mxu0 }
  0xbb   : > { %v748_v48 = vpop.f32.mrf.mxu1 }
  0xbc   : > { %v869_v49 = vsel %vm474_vm0, %v807_v46, 0  ;;  %v1681_v46 = vld [vmem:[%s2234_s2 + $0x8] sm:$0xff] }
  0xbd   : > { %878 = vmatpush.bf16.xpose.msrb.mxu3 %v869_v49  ;;  %1567 = vmatmul.msk.bf16.vlgmr.msrb.gmra.mxu0 %vm474_vm0, %v800_v44 }
  0xc0   : > { %v539_v51 = vpop.f32.mrf.mxu2 }
  0xc1   : > { %v681_v52 = vpop.f32.mrf.mxu3 }
  0xc2   : > { %v721_v58 = vpop.f32.mrf.mxu0 }
  0xc3   : > { %v933_v59 = vpack.c.bf16 %v721_v58, %v721_v58  ;;  %v1682_v58 = vld [vmem:[%s2234_s2 + $0x10] sm:$0xff] }
  0xc4   : > { %1570 = vmatmul.msk.bf16.vlgmr.msrb.gmra.mxu3 %vm474_vm0, %v803_v50 }
  0xc5   : > { %v942_v60 = vsel %vm940_vm1, %v933_v59, 0  ;;  %v1685_v59 = vld [vmem:[%s2234_s2 + $0x28] sm:$0xff] }
  0xc6   : > { %951 = vmatpush.bf16.msra.mxu0 %v942_v60 }
  0xc8   : > { %v654_v53 = vpop.f32.mrf.mxu2 }
  0xc9   : > { %v806_v54 = vpack.c.bf16 %v654_v53, %v654_v53  ;;  %v796_v62 = vpop.f32.mrf.mxu3 }
  0xca   : > { %v723_v61 = vpop.f32.mrf.mxu0  ;;  %v936_v63 = vpack.c.bf16 %v796_v62, %v796_v62  ;;  %1055 = vmatpush.bf16.msrb.mxu0 %v1681_v46  ;;  %v1684_v62 = vld [vmem:[%s2234_s2 + $0x20] sm:$0xff] }
  0xcb   : > { %v850_v55 = vsel %vm474_vm0, %v806_v54, 0 }
  0xcc   : > { %859 = vmatpush.bf16.xpose.msra.mxu2 %v850_v55  ;;  %v999_v0 = vsel %vm940_vm1, %v936_v63, 0  ;;  %v1687_v63 = vld [vmem:[%s2234_s2 + $0x38] sm:$0xff] }
  0xcd   : > { %1008 = vmatpush.bf16.msra.mxu3 %v999_v0 }
  0xd0   : > { %v656_v56 = vpop.f32.mrf.mxu2 }
  0xd1   : > { %v798_v1 = vpop.f32.mrf.mxu3  ;;  %v1680_v56 = vld [vmem:[%s2234_s2] sm:$0xff]  ;;  %1139 = vmatpush.bf16.msrb.mxu3 %v1687_v63 }
  0xd2   : > { %1056 = vmatpush.bf16.msrb.mxu0 %v1680_v56  ;;  %v1692_v56 = vld [vmem:[%s2240_s8 + $0x10] sm:$0xff] }
  0xd3   : > { %1569 = vmatmul.msk.bf16.vlgmr.msra.gmra.mxu2 %vm474_vm0, %v802_v57  ;;  %v1683_v57 = vld [vmem:[%s2234_s2 + $0x18] sm:$0xff] }
  0xd4   : > { %1083 = vmatpush.bf16.msra.mxu1 %v1683_v57 }
  0xd8   : > { %v771_v2 = vpop.f32.mrf.mxu2  ;;  %1084 = vmatpush.bf16.msra.mxu1 %v1682_v58 }
  0xd9   : > { %v935_v3 = vpack.c.bf16 %v771_v2, %v771_v2 }
  0xdb   : > { %v980_v4 = vsel %vm940_vm1, %v935_v3, 0  ;;  %v1686_v3 = vld [vmem:[%s2234_s2 + $0x30] sm:$0xff] }
  0xdc   : > { %989 = vmatpush.bf16.msrb.mxu2 %v980_v4  ;;  %1140 = vmatpush.bf16.msrb.mxu3 %v1686_v3  ;;  %v1690_v3 = vld [vmem:[%s2240_s8] sm:$0xff] }
  0xe0   : > { %v773_v5 = vpop.f32.mrf.mxu2  ;;  %1111 = vmatpush.bf16.msra.mxu2 %v1685_v59  ;;  %v1762_v59 = vld [vmem:[%s2236_s4] ss:$0 sm:$0xff] }
  0xe4   : > { %1112 = vmatpush.bf16.msra.mxu2 %v1684_v62 }
 0x12b   : > { %v842_v7 = vpop.f32.mrf.mxu1 }
 0x12c   : > { %v888_v12 = vsel %vm884_vm2, %v842_v7, -inf }
 0x133   : > { %v844_v8 = vpop.f32.mrf.mxu1 }
 0x13a   : > { %v823_v9 = vpop.f32.mrf.mxu0 }
 0x13b   : > { %v885_v10 = vsel %vm884_vm2, %v823_v9, -inf }
 0x13c   : > { %886 = vmax.xlane.f32.xlu1 %v885_v10 }
 0x142   : > { %v825_v11 = vpop.f32.mrf.mxu0 }
 0x144   : > { %889 = vmax.xlane.f32.xlu1 %v888_v12 }
 0x147   : > { %v880_v13 = vpop.f32.mrf.mxu3 }
 0x148   : > { %v894_v18 = vsel %vm884_vm2, %v880_v13, -inf }
 0x14f   : > { %v882_v14 = vpop.f32.mrf.mxu3 }
 0x156   : > { %v861_v15 = vpop.f32.mrf.mxu2 }
 0x157   : > { %v891_v16 = vsel %vm884_vm2, %v861_v15, -inf }
 0x158   : > { %892 = vmax.xlane.f32.xlu0 %v891_v16 }
 0x15e   : > { %v863_v17 = vpop.f32.mrf.mxu2 }
 0x160   : > { %895 = vmax.xlane.f32.xlu0 %v894_v18 }
 0x1af   : > { %v887_v19 = vpop.xlane.xlu1 %886 }
 0x1b0   : > { %v897_v20 = vsub.f32 %v823_v9, %v887_v19 }
 0x1b2   : > { %v901_v21 = vmul.f32 1.442695, %v897_v20 }
 0x1b4   : > { %1768 = vpow2.f32 %v901_v21 }
 0x1b7   : > { %v890_v22 = vpop.xlane.xlu1 %889 }
 0x1b8   : > { %v898_v23 = vsub.f32 %v842_v7, %v890_v22 }
 0x1ba   : > { %v1769_v24 = vpop.eup %1768  ;;  %v903_v25 = vmul.f32 1.442695, %v898_v23 }
 0x1bb   : > { %v909_v26 = vsel %vm884_vm2, %v1769_v24, 0.0 }
 0x1bc   : > { %1770 = vpow2.f32 %v903_v25  ;;  %910 = vadd.xlane.f32.xlu0 %v909_v26 }
 0x1c2   : > { %v1771_v27 = vpop.eup %1770 }
 0x1c3   : > { %v912_v28 = vsel %vm884_vm2, %v1771_v27, 0.0 }
 0x1c4   : > { %913 = vadd.xlane.f32.xlu1 %v912_v28 }
 0x1cb   : > { %v893_v29 = vpop.xlane.xlu0 %892 }
 0x1cc   : > { %v899_v30 = vsub.f32 %v861_v15, %v893_v29 }
 0x1ce   : > { %v905_v31 = vmul.f32 1.442695, %v899_v30 }
 0x1d0   : > { %1772 = vpow2.f32 %v905_v31  ;;  %v1926_v31 = vmov 32.0  }
 0x1d3   : > { %v896_v32 = vpop.xlane.xlu0 %895 }
 0x1d4   : > { %v900_v33 = vsub.f32 %v880_v13, %v896_v32 }
 0x1d6   : > { %v1773_v34 = vpop.eup %1772  ;;  %v907_v35 = vmul.f32 1.442695, %v900_v33 }
 0x1d7   : > { %v915_v36 = vsel %vm884_vm2, %v1773_v34, 0.0 }
 0x1d8   : > { %1774 = vpow2.f32 %v907_v35  ;;  %916 = vadd.xlane.f32.xlu2 %v915_v36 }
 0x1de   : > { %v1775_v37 = vpop.eup %1774 }
 0x1df   : > { %v918_v38 = vsel %vm884_vm2, %v1775_v37, 0.0 }
 0x1e0   : > { %919 = vadd.xlane.f32.xlu2 %v918_v38 }
 0x22f   : > { %v911_v39 = vpop.xlane.xlu0 %910 }
 0x230   : > { %1776 = vrcp.f32 %v911_v39 }
 0x236   : > { %v1777_v40 = vpop.eup %1776 }
 0x237   : > { %v925_v41 = vmul.f32 %v1777_v40, %v1769_v24  ;;  %v914_v42 = vpop.xlane.xlu1 %913  ;;  %v1761_v24 = vld [vmem:[%s2235_s3] ss:$0 sm:$0xff] }
 0x238   : > { %1778 = vrcp.f32 %v914_v42  ;;  %v1689_v42 = vld [vmem:[#allocation5 + $0x8] sm:$0xff] }
 0x239   : > { %v929_v43 = vpack.c.bf16 %v925_v41, %v925_v41 }
 0x23b   : > { %1571 = vmatmul.msk.bf16.vlgmr.msra.gmra.mxu0 %vm884_vm2, %v929_v43  ;;  %v1688_v43 = vld [vmem:[#allocation5] sm:$0xff] }
 0x23c   : > { %1228 = vmatpush.bf16.msra.mxu0 %v1689_v42 }
 0x23e   : > { %v1779_v44 = vpop.eup %1778 }
 0x23f   : > { %v926_v45 = vmul.f32 %v1779_v44, %v1771_v27  ;;  %v1697_v44 = vld [vmem:[%s2240_s8 + $0x38] sm:$0xff] }
 0x240   : > { %1229 = vmatpush.bf16.msra.mxu0 %v1688_v43 }
 0x241   : > { %v930_v47 = vpack.c.bf16 %v926_v45, %v926_v45 }
 0x243   : > { %1572 = vmatmul.msk.bf16.vlgmr.msrb.gmra.mxu1 %vm884_vm2, %v930_v47  ;;  %v1696_v47 = vld [vmem:[%s2240_s8 + $0x30] sm:$0xff] }
 0x244   : > { %1305 = vmatpush.bf16.msrb.mxu1 %v1697_v44 }
 0x248   : > { %1306 = vmatpush.bf16.msrb.mxu1 %v1696_v47 }
 0x24b   : > { %v917_v48 = vpop.xlane.xlu2 %916 }
 0x24c   : > { %1780 = vrcp.f32 %v917_v48 }
 0x252   : > { %v1781_v49 = vpop.eup %1780 }
 0x253   : > { %v927_v50 = vmul.f32 %v1781_v49, %v1773_v34  ;;  %v920_v51 = vpop.xlane.xlu2 %919  ;;  %v1695_v49 = vld [vmem:[%s2240_s8 + $0x28] sm:$0xff] }
 0x254   : > { %1782 = vrcp.f32 %v920_v51  ;;  %1307 = vmatpush.bf16.msrb.mxu1 %v1695_v49 }
 0x255   : > { %v931_v52 = vpack.c.bf16 %v927_v50, %v927_v50  ;;  %1784 = vrcp.f32 %v1926_v31  ;;  %v1694_v50 = vld [vmem:[%s2240_s8 + $0x20] sm:$0xff] }
 0x256   : > { %v1766_v31 = vld [vmem:[%s2242_s10] ss:$0 sm:$0xff] }
 0x257   : > { %1573 = vmatmul.msk.bf16.vlgmr.msrb.gmra.mxu2 %vm884_vm2, %v931_v52 }
 0x258   : > { %1308 = vmatpush.bf16.msrb.mxu1 %v1694_v50 }
 0x25a   : > { %v1783_v53 = vpop.eup %1782 }
 0x25b   : > { %v928_v54 = vmul.f32 %v1783_v53, %v1775_v37  ;;  %v1785_v32 = vpop.eup %1784  ;;  %v1693_v53 = vld [vmem:[%s2240_s8 + $0x18] sm:$0xff] }
 0x25c   : > { %v1165_v33 = vmul.f32 32.0, %v1785_v32  ;;  %vm1169_vm3 = vweird.f32 %v1785_v32  ;;  %1309 = vmatpush.bf16.msrb.mxu1 %v1693_v53 }
 0x25d   : > { %v932_v55 = vpack.c.bf16 %v928_v54, %v928_v54 }
 0x25e   : > { %v1166_v34 = vsub.f32 1.0, %v1165_v33 }
 0x25f   : > { %1574 = vmatmul.msk.bf16.vlgmr.msra.gmra.mxu3 %vm884_vm2, %v932_v55 }
 0x260   : > { %v1167_v35 = vmul.f32 %v1785_v32, %v1166_v34  ;;  %1310 = vmatpush.bf16.msrb.mxu1 %v1692_v56  ;;  %v1767_v34 = vld [vmem:[%s2243_s11] ss:$0 sm:$0xff] }
 0x262   : > { %v1168_v36 = vadd.f32 %v1785_v32, %v1167_v35 }
 0x264   : > { %v2147_v37 = vsel %vm1169_vm3, %v1785_v32, %v1168_v36 }
 0x2b8   : > { %v953_v60 = vpop.f32.mrf.mxu0 }
 0x2b9   : > { %v1014_v61 = vpack.c.bf16 %v953_v60, %v953_v60 }
 0x2bb   : > { %1583 = vmatmul.msk.bf16.vlgmr.msrb.gmra.mxu0 %vm474_vm0, %v1014_v61  ;;  %v1763_v61 = vld [vmem:[%s2237_s5] ss:$0 sm:$0xff] }
 0x2c0   : > { %v955_v0 = vpop.f32.mrf.mxu0  ;;  %v972_v1 = vpop.f32.mrf.mxu1 }
 0x2c1   : > { %v1015_v2 = vpack.c.bf16 %v972_v1, %v972_v1 }
 0x2c3   : > { %1592 = vmatmul.msk.bf16.vlgmr.msra.gmra.mxu1 %vm474_vm0, %v1015_v2  ;;  %v1691_v2 = vld [vmem:[%s2240_s8 + $0x8] sm:$0xff] }
 0x2c4   : > { %1311 = vmatpush.bf16.msrb.mxu1 %v1691_v2 }
 0x2c8   : > { %v974_v4 = vpop.f32.mrf.mxu1  ;;  %1312 = vmatpush.bf16.msrb.mxu1 %v1690_v3 }
 0x2c9   : > { %v1764_v4 = vld [vmem:[%s2239_s7] ss:$0 sm:$0xff] }
 0x2da   : > { %v991_v5 = vpop.f32.mrf.mxu2 }
 0x2db   : > { %v1016_v7 = vpack.c.bf16 %v991_v5, %v991_v5 }
 0x2dd   : > { %1601 = vmatmul.msk.bf16.vlgmr.msra.gmra.mxu2 %vm474_vm0, %v1016_v7 }
 0x2e2   : > { %v993_v8 = vpop.f32.mrf.mxu2  ;;  %v1010_v9 = vpop.f32.mrf.mxu3 }
 0x2e3   : > { %v1017_v10 = vpack.c.bf16 %v1010_v9, %v1010_v9 }
 0x2e5   : > { %1610 = vmatmul.msk.bf16.vlgmr.msrb.gmra.mxu3 %vm474_vm0, %v1017_v10 }
 0x2ea   : > { %v1012_v11 = vpop.f32.mrf.mxu3 }
 0x2eb   : > { %v1765_v11 = vld [vmem:[%s2241_s9] ss:$0 sm:$0xff] }
 0x338   : > { %v1058_v12 = vpop.f32.mrf.mxu0 }
 0x339   : > { %v1146_v18 = vsel %vm474_vm0, %v1058_v12, 0.0 }
 0x340   : > { %v1060_v13 = vpop.f32.mrf.mxu0  ;;  %v1086_v14 = vpop.f32.mrf.mxu1 }
 0x341   : > { %v1147_v17 = vsel %vm474_vm0, %v1086_v14, 0.0 }
 0x342   : > { %v1148_v20 = vadd.f32 %v1147_v17, %v1146_v18 }
 0x348   : > { %v1088_v15 = vpop.f32.mrf.mxu1 }
 0x360   : > { %v1114_v16 = vpop.f32.mrf.mxu2 }
 0x361   : > { %v1149_v19 = vsel %vm474_vm0, %v1114_v16, 0.0 }
 0x362   : > { %v1150_v21 = vadd.f32 %v1149_v19, %v1148_v20 }
 0x368   : > { %v1116_v22 = vpop.f32.mrf.mxu2  ;;  %v1142_v23 = vpop.f32.mrf.mxu3 }
 0x369   : > { %v1151_v25 = vsel %vm474_vm0, %v1142_v23, 0.0 }
 0x36a   : > { %v1152_v26 = vadd.f32 %v1151_v25, %v1150_v21 }
 0x36c   : > { %v1157_v27 = vadd.f32 %v1761_v24, %v1152_v26 }
 0x36e   : > { %v1158_v28 = vadd.f32 %v1157_v27, %v2070_v6 }
 0x370   : > { %v1144_v29 = vpop.f32.mrf.mxu3  ;;  %v1161_v30 = vsel %vm474_vm0, %v1158_v28, 0.0 }
 0x371   : > { %1162 = vadd.xlane.f32.xlu2 %v1161_v30 }
 0x3e4   : > { %v1163_v38 = vpop.xlane.xlu2 %1162 }
 0x3e5   : > { %v1171_v39 = vmul.f32 %v2147_v37, %v1163_v38 }
 0x3e7   : > { %v1172_v40 = vsub.f32 %v1158_v28, %v1171_v39 }
 0x3e9   : > { %v1173_v41 = vmul.f32 %v1172_v40, %v1172_v40 }
 0x3eb   : > { %v1174_v6 = vsel %vm474_vm0, %v1173_v41, 0.0 }
 0x3ec   : > { %1175 = vadd.xlane.f32.xlu0 %v1174_v6 }
 0x45f   : > { %v1176_v45 = vpop.xlane.xlu0 %1175 }
 0x460   : > { %v1177_v46 = vmul.f32 %v1176_v45, %v2147_v37 }
 0x462   : > { %v1178_v48 = vadd.f32 1e-05, %v1177_v46 }
 0x464   : > { %1786 = vrsqrt.f32 %v1178_v48  ;;  %vm1185_vm5 = vweird.f32 %v1178_v48 }
 0x46a   : > { %v1787_v51 = vpop.eup %1786 }
 0x46b   : > { %v1180_v52 = vmul.f32 %v1787_v51, %v1178_v48  ;;  %vm1186_vm4 = vweird.f32 %v1787_v51 }
 0x46c   : > { %vm1187_vm6 = vmor %vm1185_vm5, %vm1186_vm4 }
 0x46d   : > { %v1181_v54 = vmul.f32 %v1787_v51, %v1180_v52 }
 0x46f   : > { %v1182_v55 = vmul.f32 0.5, %v1181_v54 }
 0x471   : > { %v1183_v57 = vsub.f32 1.5, %v1182_v55 }
 0x473   : > { %v1184_v58 = vmul.f32 %v1787_v51, %v1183_v57 }
 0x475   : > { %v1188_v60 = vsel %vm1187_vm6, %v1787_v51, %v1184_v58 }
 0x476   : > { %v1189_v62 = vmul.f32 %v1188_v60, %v1172_v40 }
 0x478   : > { %v1193_v63 = vmul.f32 %v1762_v59, %v1189_v62 }
 0x47a   : > { %v1197_v0 = vadd.f32 %v1763_v61, %v1193_v63 }
 0x47c   : > { %v1198_v1 = vpack.c.bf16 %v1197_v0, %v1197_v0 }
 0x47e   : > { %1619 = vmatmul.msk.bf16.vlgmr.msra.gmra.mxu0 %vm474_vm0, %v1198_v1 }
 0x4fb   : > { %v1231_v5 = vpop.f32.mrf.mxu0 }
 0x4fc   : > { %v1232_v7 = vadd.f32 %v1764_v4, %v1231_v5 }
 0x4fe   : > { %v1235_v8 = vmax.f32 %v1232_v7, 0.0 }
 0x500   : > { %v1236_v9 = vpack.c.bf16 %v1235_v8, %v1235_v8 }
 0x502   : > { %1313 = vmatmul.bf16.vlgmr.msrb.gmra.mxu1 %v1236_v9 }
 0x503   : > { %v1233_v10 = vpop.f32.mrf.mxu0 }
 0x57f   : > { %v1314_v12 = vpop.f32.mrf.mxu1 }
 0x580   : > { %v1315_v13 = vadd.f32 %v1765_v11, %v1314_v12 }
 0x582   : > { %v1318_v14 = vadd.f32 %v1315_v13, %v1197_v0 }
 0x584   : > { %v1321_v15 = vsel %vm474_vm0, %v1318_v14, 0.0 }
 0x585   : > { %1322 = vadd.xlane.f32.xlu1 %v1321_v15 }
 0x587   : > { %v1316_v16 = vpop.f32.mrf.mxu1 }
 0x5f8   : > { %v1323_v17 = vpop.xlane.xlu1 %1322 }
 0x5f9   : > { %v1324_v18 = vmul.f32 %v1323_v17, %v2147_v37 }
 0x5fb   : > { %v1325_v19 = vsub.f32 %v1318_v14, %v1324_v18 }
 0x5fd   : > { %v1326_v20 = vmul.f32 %v1325_v19, %v1325_v19 }
 0x5ff   : > { %v1327_v21 = vsel %vm474_vm0, %v1326_v20, 0.0 }
 0x600   : > { %1328 = vadd.xlane.f32.xlu2 %v1327_v21 }
 0x673   : > { %v1329_v22 = vpop.xlane.xlu2 %1328 }
 0x674   : > { %v1330_v23 = vmul.f32 %v1329_v22, %v2147_v37 }
 0x676   : > { %v1331_v24 = vadd.f32 1e-05, %v1330_v23 }
 0x678   : > { %1788 = vrsqrt.f32 %v1331_v24  ;;  %vm1338_vm8 = vweird.f32 %v1331_v24 }
 0x67e   : > { %v1789_v25 = vpop.eup %1788 }
 0x67f   : > { %v1333_v26 = vmul.f32 %v1789_v25, %v1331_v24  ;;  %vm1339_vm7 = vweird.f32 %v1789_v25 }
 0x680   : > { %vm1340_vm9 = vmor %vm1338_vm8, %vm1339_vm7 }
 0x681   : > { %v1334_v27 = vmul.f32 %v1789_v25, %v1333_v26 }
 0x683   : > { %v1335_v28 = vmul.f32 0.5, %v1334_v27 }
 0x685   : > { %v1336_v29 = vsub.f32 1.5, %v1335_v28 }
 0x687   : > { %v1337_v30 = vmul.f32 %v1789_v25, %v1336_v29 }
 0x689   : > { %v1341_v32 = vsel %vm1340_vm9, %v1789_v25, %v1337_v30 }
 0x68a   : > { %v1342_v33 = vmul.f32 %v1341_v32, %v1325_v19 }
 0x68c   : > { %v1346_v35 = vmul.f32 %v1766_v31, %v1342_v33 }
 0x68e   : > { %v1350_v36 = vadd.f32 %v1767_v34, %v1346_v35 }
 0x690   : > { %1351 = vst.msk [vmem:[%s438_s28] sm:$0xff] %vm474_vm0, %v1350_v36 }
 0x691   : > { %1877 = shalt.err (!%p1874_p8)
}
 0x692   : > { %1706 = dma.vmem_to_hbm [thread:$0]  (%p2030_p5), %s1366_s25, 128, %s1368_s29, %s1353_s30  }
 0x693 PF: > { %p1723_p9 = scmp.ge.s32.totalorder %s1920_s24, 2  ;;  %s1379_s16 = sand.u32 1, %s1908_s21  }
 0x694   : > { %s1380_s26 = scalar_lea.sflag [#allocation4], %s1379_s16 }
 0x695   : > { %p1716_p10 = pnand %p1723_p9, %p2034_p6 }
 0x697   : > { %p1717_p11 = pneg %p1716_p10 }
 0x699   : > { %1903 = dma.done.wait (%p1717_p11), %s1380_s26, 128  }
 0x69a   : > { %1905 = vsyncadd (%p1717_p11), %s1380_s26, 4294967168  ;;  %s2254_s24 = sld [smem:[#allocation12_spill]]  ;;  %s2257_s21 = smov %s1912_s22 }
 0x69b   : > { %s2255_s28 = sld [smem:[#allocation11_spill]] }
 0x69c   : > { %s2256_s23 = sld [smem:[#allocation13_spill]] }
 0x6a0   : > { %p24_p12 = scmp.ge.s32.totalorder %s2254_s24, 4  }
 0x6a1   : > { %s2258_s22 = smov %s2255_s28 }
 0x6a2   :  { %26 = sbr.rel (!%p24_p12) target bundleno = 5 (0x5), region = 114 }
 0x6a7   :  { %1386 = vsyncpa [#allocation3], 1 }
 0x6a8   :  { %1388 = vsyncpa [#allocation3 + $0x1], 1 }
 0x6a9   :  { %1389 = vsyncpa [#allocation6], 1 }
 0x6aa   :  { %1390 = vsyncpa [#allocation4], 1 }
 0x6ab   :  { %1392 = vsyncpa [#allocation4 + $0x1], 1 }

</bundles_post_ra>
